<compile_context>
chip_gen: v7x
topology: tpu7x:2x2x1
jax: 0.10.0
libtpu: 0.0.40
codegen_flags: <defaults>
</compile_context>

<pallas_src>
import numpy as np
import jax
import jax.numpy as jnp
from jax import lax
from jax.experimental import pallas as pl
from jax.experimental.pallas import tpu as pltpu

N_QUBITS = 4
N_LAYERS = 2
BATCH = 8
DIM = 2 ** N_QUBITS


# ----------------------------- Pallas kernel ------------------------------ #
def _quantum_layer_kernel(x_ref, w_quad_ref, out_ref):
    b, q = x_ref.shape
    dim2 = w_quad_ref.shape[0]        # DIM * DIM
    nbits = 2 * q                      # bits of the (k, l) pair index

    # RX product-state magnitudes on the VPU (all phases folded into W_quad).
    half = 0.5 * x_ref[...]            # (B, Q)
    cosv = jnp.cos(half)
    sinv = jnp.sin(half)

    # Build mag ⊗ mag directly in (B, DIM^2) layout: index m = k*DIM + l,
    # bits [2Q-1..Q] are k's bits, bits [Q-1..0] are l's bits, qubit i of
    # either register selects sin_i (bit==1) or cos_i (bit==0).
    idx = lax.broadcasted_iota(jnp.int32, (b, dim2), 1)
    mag2 = None
    for j in range(nbits):             # static unroll, 2*Q is tiny
        i = j % q
        bit = (idx >> (nbits - 1 - j)) & 1
        f = jnp.where(bit == 1, sinv[:, i:i + 1], cosv[:, i:i + 1])  # (B, DIM^2)
        mag2 = f if mag2 is None else mag2 * f

    # Single real matmul: circuit evolution + |.|^2 + <Z> + repetition-code
    # decode + readout mitigation, all pre-folded into W_quad on the host.
    out_ref[...] = jnp.dot(mag2, w_quad_ref[...],
                           preferred_element_type=jnp.float32)       # (B, Q)


# ------------------------------- glue (host numpy) ------------------------ #
def _kron_list(mats):
    out = mats[0]
    for m in mats[1:]:
        out = np.kron(out, m)
    return out


def _build_circuit_gates(params_np, n_qubits):
    """Per-gate dense (G, DIM, DIM) complex128 unitaries, pre-transposed so
    row-vector states evolve as psi_new = psi @ U^T."""
    i2 = np.eye(2, dtype=np.complex128)
    cnot4 = np.array([[1, 0, 0, 0],
                      [0, 1, 0, 0],
                      [0, 0, 0, 1],
                      [0, 0, 1, 0]], dtype=np.complex128)  # control = MSB of pair
    gates = []
    n_layers = params_np.shape[0]
    for layer in range(n_layers):
        for qb in range(n_qubits):
            phi, theta, omega = (float(v) for v in params_np[layer, qb])
            c, s = np.cos(theta / 2.0), np.sin(theta / 2.0)
            rot = np.array(
                [[np.exp(-0.5j * (phi + omega)) * c, -np.exp(0.5j * (phi - omega)) * s],
                 [np.exp(-0.5j * (phi - omega)) * s,  np.exp(0.5j * (phi + omega)) * c]],
                dtype=np.complex128)  # qml.Rot(phi,theta,omega) = RZ(omega) RY(theta) RZ(phi)
            mats = [i2] * n_qubits
            mats[qb] = rot
            gates.append(_kron_list(mats))
        for qb in range(n_qubits - 1):
            mats = [i2] * qb + [cnot4] + [i2] * (n_qubits - qb - 2)
            gates.append(_kron_list(mats))
    u = np.stack(gates)
    return np.transpose(u, (0, 2, 1))          # (G, DIM, DIM): U_g^T


def _fold_quadratic_readout(params_np, n_qubits):
    """Fold the whole (batch-independent) circuit + readout into ONE small
    real matrix W_quad consumed by the kernel."""
    dim = 2 ** n_qubits
    gates_t = _build_circuit_gates(params_np, n_qubits)   # float64/complex128
    u_chain_t = np.eye(dim, dtype=np.complex128)
    for g in range(gates_t.shape[0]):
        u_chain_t = u_chain_t @ gates_t[g]                # = (U_G ... U_1)^T

    # Fold the batch-independent RX phase (-i)^popcount(k) into the unitary:
    # amplitude_n = sum_k mag_k * A[k, n].
    n_idx = np.arange(dim)
    popcnt = np.array([bin(int(n)).count("1") for n in n_idx])
    phase = (-1j) ** popcnt
    a = phase[:, None] * u_chain_t                        # (DIM, DIM)

    # Fused readout: out = 2*(C @ ((0.5*z + 1)/2)) - 1
    #                    = probs @ (0.5 * zsign @ C^T) + (rowsum(C) - 1)
    # TODO(synk): calibrate_readout_errors() in the reference builds a 2^n x 2^n
    # pinv and applies it to a length-n vector (shape-inconsistent); on an ideal
    # default.qubit device the calibration is identity, so C = I and bias = 0.
    bits = ((n_idx[:, None] >> (n_qubits - 1 - np.arange(n_qubits))[None, :]) & 1)
    zsign = 1.0 - 2.0 * bits                              # (DIM, Q): probs -> <Z_i>
    calib = np.eye(n_qubits)
    w_out = 0.5 * (zsign @ calib.T)                       # 0.5 = repetition-code decode

    # probs_n = sum_{k,l} mag_k mag_l Re(A_kn conj(A_ln))  ->  quadratic readout:
    # out[b, q] = sum_{k,l} mag_k mag_l * W_quad[k*DIM + l, q]
    w_quad = np.einsum('kn,ln,nq->klq', a, np.conj(a), w_out).real
    w_quad = w_quad.reshape(dim * dim, n_qubits)          # (DIM^2, Q)
    return jnp.asarray(w_quad, dtype=jnp.float32)


def noise_aware_quantum_layer(x, params):
    """x: (B, n_qubits) f32 angles; params: (n_layers, n_qubits, 3) f32. -> (B, n_qubits)."""
    b, q = x.shape
    w_quad = _fold_quadratic_readout(np.asarray(params, dtype=np.float64), q)

    vmem = pl.BlockSpec(memory_space=pltpu.MemorySpace.VMEM)
    return pl.pallas_call(
        _quantum_layer_kernel,
        out_shape=jax.ShapeDtypeStruct((b, q), jnp.float32),
        in_specs=[vmem, vmem],
        out_specs=vmem,
    )(x.astype(jnp.float32), w_quad)


# ------------------------------- reference -------------------------------- #
def _reference_forward(x, params):
    x_np = np.asarray(x, dtype=np.float64)
    b, q = x_np.shape
    n = 2 ** q
    gates_t = _build_circuit_gates(np.asarray(params, dtype=np.float64), q)
    bits = ((np.arange(n)[:, None] >> (q - 1 - np.arange(q))[None, :]) & 1)
    out = np.zeros((b, q), dtype=np.float64)
    for bb in range(b):
        half = 0.5 * x_np[bb]
        psi = np.array([1.0 + 0.0j])
        for i in range(q):
            psi = np.kron(psi, np.array([np.cos(half[i]), -1j * np.sin(half[i])]))
        for g in range(gates_t.shape[0]):
            psi = psi @ gates_t[g]
        probs = np.abs(psi) ** 2
        z = probs @ (1.0 - 2.0 * bits)
        raw = 0.5 * z                                     # repetition-code decode
        out[bb] = 2.0 * (np.eye(q) @ (0.5 * (raw + 1.0))) - 1.0
    return out.astype(np.float32)


if __name__ == "__main__":
    key = jax.random.PRNGKey(0)
    kx, kp = jax.random.split(key)
    x = jax.random.normal(kx, (BATCH, N_QUBITS), dtype=jnp.float32)
    params = jax.random.normal(kp, (N_LAYERS, N_QUBITS, 3), dtype=jnp.float32)

    out = noise_aware_quantum_layer(x, params)
    out = jax.block_until_ready(out)

    ref = _reference_forward(x, params)
    np.testing.assert_allclose(np.asarray(out), ref, rtol=1e-3, atol=1e-3)
    print("KERNEL_OK")
</pallas_src>

<mosaic_0001>
module attributes {stable_mosaic.version = 11 : i64} {
  func.func @_quantum_layer_kernel(%arg0: memref<8x4xf32, #tpu.memory_space<vmem>>, %arg1: memref<256x4xf32, #tpu.memory_space<vmem>>, %arg2: memref<8x4xf32, #tpu.memory_space<vmem>>) attributes {dimension_semantics = [], scalar_prefetch = 0 : i64, scratch_operands = 0 : i64, tpu.core_type = #tpu.core_type<tc>} {
    %c0 = arith.constant 0 : index
    %c0_0 = arith.constant 0 : index
    %0 = vector.load %arg0[%c0, %c0_0] : memref<8x4xf32, #tpu.memory_space<vmem>>, vector<8x4xf32>
    %cst = arith.constant 5.000000e-01 : f32
    %1 = vector.broadcast %cst : f32 to vector<8x4xf32>
    %2 = arith.mulf %1, %0 : vector<8x4xf32>
    %3 = math.cos %2 : vector<8x4xf32>
    %4 = math.sin %2 : vector<8x4xf32>
    %5 = tpu.iota {dimensions = array<i32: 1>} : vector<8x256xi32>
    %c7_i32 = arith.constant 7 : i32
    %6 = vector.broadcast %c7_i32 : i32 to vector<8x256xi32>
    %7 = arith.shrsi %5, %6 : vector<8x256xi32>
    %c1_i32 = arith.constant 1 : i32
    %8 = vector.broadcast %c1_i32 : i32 to vector<8x256xi32>
    %9 = arith.andi %7, %8 : vector<8x256xi32>
    %c1_i32_1 = arith.constant 1 : i32
    %10 = vector.broadcast %c1_i32_1 : i32 to vector<8x256xi32>
    %11 = arith.cmpi eq, %9, %10 : vector<8x256xi32>
    %12 = vector.extract_strided_slice %4 {offsets = [0, 0], sizes = [8, 1], strides = [1, 1]} : vector<8x4xf32> to vector<8x1xf32>
    %13 = vector.extract_strided_slice %3 {offsets = [0, 0], sizes = [8, 1], strides = [1, 1]} : vector<8x4xf32> to vector<8x1xf32>
    %14 = vector.shape_cast %12 : vector<8x1xf32> to vector<8x1xf32>
    %15 = vector.broadcast %14 : vector<8x1xf32> to vector<8x256xf32>
    %16 = vector.shape_cast %13 : vector<8x1xf32> to vector<8x1xf32>
    %17 = vector.broadcast %16 : vector<8x1xf32> to vector<8x256xf32>
    %18 = arith.select %11, %15, %17 : vector<8x256xi1>, vector<8x256xf32>
    %c6_i32 = arith.constant 6 : i32
    %19 = vector.broadcast %c6_i32 : i32 to vector<8x256xi32>
    %20 = arith.shrsi %5, %19 : vector<8x256xi32>
    %c1_i32_2 = arith.constant 1 : i32
    %21 = vector.broadcast %c1_i32_2 : i32 to vector<8x256xi32>
    %22 = arith.andi %20, %21 : vector<8x256xi32>
    %c1_i32_3 = arith.constant 1 : i32
    %23 = vector.broadcast %c1_i32_3 : i32 to vector<8x256xi32>
    %24 = arith.cmpi eq, %22, %23 : vector<8x256xi32>
    %25 = vector.extract_strided_slice %4 {offsets = [0, 1], sizes = [8, 1], strides = [1, 1]} : vector<8x4xf32> to vector<8x1xf32>
    %26 = vector.extract_strided_slice %3 {offsets = [0, 1], sizes = [8, 1], strides = [1, 1]} : vector<8x4xf32> to vector<8x1xf32>
    %27 = vector.shape_cast %25 : vector<8x1xf32> to vector<8x1xf32>
    %28 = vector.broadcast %27 : vector<8x1xf32> to vector<8x256xf32>
    %29 = vector.shape_cast %26 : vector<8x1xf32> to vector<8x1xf32>
    %30 = vector.broadcast %29 : vector<8x1xf32> to vector<8x256xf32>
    %31 = arith.select %24, %28, %30 : vector<8x256xi1>, vector<8x256xf32>
    %32 = arith.mulf %18, %31 : vector<8x256xf32>
    %c5_i32 = arith.constant 5 : i32
    %33 = vector.broadcast %c5_i32 : i32 to vector<8x256xi32>
    %34 = arith.shrsi %5, %33 : vector<8x256xi32>
    %c1_i32_4 = arith.constant 1 : i32
    %35 = vector.broadcast %c1_i32_4 : i32 to vector<8x256xi32>
    %36 = arith.andi %34, %35 : vector<8x256xi32>
    %c1_i32_5 = arith.constant 1 : i32
    %37 = vector.broadcast %c1_i32_5 : i32 to vector<8x256xi32>
    %38 = arith.cmpi eq, %36, %37 : vector<8x256xi32>
    %39 = vector.extract_strided_slice %4 {offsets = [0, 2], sizes = [8, 1], strides = [1, 1]} : vector<8x4xf32> to vector<8x1xf32>
    %40 = vector.extract_strided_slice %3 {offsets = [0, 2], sizes = [8, 1], strides = [1, 1]} : vector<8x4xf32> to vector<8x1xf32>
    %41 = vector.shape_cast %39 : vector<8x1xf32> to vector<8x1xf32>
    %42 = vector.broadcast %41 : vector<8x1xf32> to vector<8x256xf32>
    %43 = vector.shape_cast %40 : vector<8x1xf32> to vector<8x1xf32>
    %44 = vector.broadcast %43 : vector<8x1xf32> to vector<8x256xf32>
    %45 = arith.select %38, %42, %44 : vector<8x256xi1>, vector<8x256xf32>
    %46 = arith.mulf %32, %45 : vector<8x256xf32>
    %c4_i32 = arith.constant 4 : i32
    %47 = vector.broadcast %c4_i32 : i32 to vector<8x256xi32>
    %48 = arith.shrsi %5, %47 : vector<8x256xi32>
    %c1_i32_6 = arith.constant 1 : i32
    %49 = vector.broadcast %c1_i32_6 : i32 to vector<8x256xi32>
    %50 = arith.andi %48, %49 : vector<8x256xi32>
    %c1_i32_7 = arith.constant 1 : i32
    %51 = vector.broadcast %c1_i32_7 : i32 to vector<8x256xi32>
    %52 = arith.cmpi eq, %50, %51 : vector<8x256xi32>
    %53 = vector.extract_strided_slice %4 {offsets = [0, 3], sizes = [8, 1], strides = [1, 1]} : vector<8x4xf32> to vector<8x1xf32>
    %54 = vector.extract_strided_slice %3 {offsets = [0, 3], sizes = [8, 1], strides = [1, 1]} : vector<8x4xf32> to vector<8x1xf32>
    %55 = vector.shape_cast %53 : vector<8x1xf32> to vector<8x1xf32>
    %56 = vector.broadcast %55 : vector<8x1xf32> to vector<8x256xf32>
    %57 = vector.shape_cast %54 : vector<8x1xf32> to vector<8x1xf32>
    %58 = vector.broadcast %57 : vector<8x1xf32> to vector<8x256xf32>
    %59 = arith.select %52, %56, %58 : vector<8x256xi1>, vector<8x256xf32>
    %60 = arith.mulf %46, %59 : vector<8x256xf32>
    %c3_i32 = arith.constant 3 : i32
    %61 = vector.broadcast %c3_i32 : i32 to vector<8x256xi32>
    %62 = arith.shrsi %5, %61 : vector<8x256xi32>
    %c1_i32_8 = arith.constant 1 : i32
    %63 = vector.broadcast %c1_i32_8 : i32 to vector<8x256xi32>
    %64 = arith.andi %62, %63 : vector<8x256xi32>
    %c1_i32_9 = arith.constant 1 : i32
    %65 = vector.broadcast %c1_i32_9 : i32 to vector<8x256xi32>
    %66 = arith.cmpi eq, %64, %65 : vector<8x256xi32>
    %67 = vector.extract_strided_slice %4 {offsets = [0, 0], sizes = [8, 1], strides = [1, 1]} : vector<8x4xf32> to vector<8x1xf32>
    %68 = vector.extract_strided_slice %3 {offsets = [0, 0], sizes = [8, 1], strides = [1, 1]} : vector<8x4xf32> to vector<8x1xf32>
    %69 = vector.shape_cast %67 : vector<8x1xf32> to vector<8x1xf32>
    %70 = vector.broadcast %69 : vector<8x1xf32> to vector<8x256xf32>
    %71 = vector.shape_cast %68 : vector<8x1xf32> to vector<8x1xf32>
    %72 = vector.broadcast %71 : vector<8x1xf32> to vector<8x256xf32>
    %73 = arith.select %66, %70, %72 : vector<8x256xi1>, vector<8x256xf32>
    %74 = arith.mulf %60, %73 : vector<8x256xf32>
    %c2_i32 = arith.constant 2 : i32
    %75 = vector.broadcast %c2_i32 : i32 to vector<8x256xi32>
    %76 = arith.shrsi %5, %75 : vector<8x256xi32>
    %c1_i32_10 = arith.constant 1 : i32
    %77 = vector.broadcast %c1_i32_10 : i32 to vector<8x256xi32>
    %78 = arith.andi %76, %77 : vector<8x256xi32>
    %c1_i32_11 = arith.constant 1 : i32
    %79 = vector.broadcast %c1_i32_11 : i32 to vector<8x256xi32>
    %80 = arith.cmpi eq, %78, %79 : vector<8x256xi32>
    %81 = vector.extract_strided_slice %4 {offsets = [0, 1], sizes = [8, 1], strides = [1, 1]} : vector<8x4xf32> to vector<8x1xf32>
    %82 = vector.extract_strided_slice %3 {offsets = [0, 1], sizes = [8, 1], strides = [1, 1]} : vector<8x4xf32> to vector<8x1xf32>
    %83 = vector.shape_cast %81 : vector<8x1xf32> to vector<8x1xf32>
    %84 = vector.broadcast %83 : vector<8x1xf32> to vector<8x256xf32>
    %85 = vector.shape_cast %82 : vector<8x1xf32> to vector<8x1xf32>
    %86 = vector.broadcast %85 : vector<8x1xf32> to vector<8x256xf32>
    %87 = arith.select %80, %84, %86 : vector<8x256xi1>, vector<8x256xf32>
    %88 = arith.mulf %74, %87 : vector<8x256xf32>
    %c1_i32_12 = arith.constant 1 : i32
    %89 = vector.broadcast %c1_i32_12 : i32 to vector<8x256xi32>
    %90 = arith.shrsi %5, %89 : vector<8x256xi32>
    %c1_i32_13 = arith.constant 1 : i32
    %91 = vector.broadcast %c1_i32_13 : i32 to vector<8x256xi32>
    %92 = arith.andi %90, %91 : vector<8x256xi32>
    %c1_i32_14 = arith.constant 1 : i32
    %93 = vector.broadcast %c1_i32_14 : i32 to vector<8x256xi32>
    %94 = arith.cmpi eq, %92, %93 : vector<8x256xi32>
    %95 = vector.extract_strided_slice %4 {offsets = [0, 2], sizes = [8, 1], strides = [1, 1]} : vector<8x4xf32> to vector<8x1xf32>
    %96 = vector.extract_strided_slice %3 {offsets = [0, 2], sizes = [8, 1], strides = [1, 1]} : vector<8x4xf32> to vector<8x1xf32>
    %97 = vector.shape_cast %95 : vector<8x1xf32> to vector<8x1xf32>
    %98 = vector.broadcast %97 : vector<8x1xf32> to vector<8x256xf32>
    %99 = vector.shape_cast %96 : vector<8x1xf32> to vector<8x1xf32>
    %100 = vector.broadcast %99 : vector<8x1xf32> to vector<8x256xf32>
    %101 = arith.select %94, %98, %100 : vector<8x256xi1>, vector<8x256xf32>
    %102 = arith.mulf %88, %101 : vector<8x256xf32>
    %c0_i32 = arith.constant 0 : i32
    %103 = vector.broadcast %c0_i32 : i32 to vector<8x256xi32>
    %104 = arith.shrsi %5, %103 : vector<8x256xi32>
    %c1_i32_15 = arith.constant 1 : i32
    %105 = vector.broadcast %c1_i32_15 : i32 to vector<8x256xi32>
    %106 = arith.andi %104, %105 : vector<8x256xi32>
    %c1_i32_16 = arith.constant 1 : i32
    %107 = vector.broadcast %c1_i32_16 : i32 to vector<8x256xi32>
    %108 = arith.cmpi eq, %106, %107 : vector<8x256xi32>
    %109 = vector.extract_strided_slice %4 {offsets = [0, 3], sizes = [8, 1], strides = [1, 1]} : vector<8x4xf32> to vector<8x1xf32>
    %110 = vector.extract_strided_slice %3 {offsets = [0, 3], sizes = [8, 1], strides = [1, 1]} : vector<8x4xf32> to vector<8x1xf32>
    %111 = vector.shape_cast %109 : vector<8x1xf32> to vector<8x1xf32>
    %112 = vector.broadcast %111 : vector<8x1xf32> to vector<8x256xf32>
    %113 = vector.shape_cast %110 : vector<8x1xf32> to vector<8x1xf32>
    %114 = vector.broadcast %113 : vector<8x1xf32> to vector<8x256xf32>
    %115 = arith.select %108, %112, %114 : vector<8x256xi1>, vector<8x256xf32>
    %116 = arith.mulf %102, %115 : vector<8x256xf32>
    %c0_17 = arith.constant 0 : index
    %c0_18 = arith.constant 0 : index
    %117 = vector.load %arg1[%c0_17, %c0_18] : memref<256x4xf32, #tpu.memory_space<vmem>>, vector<256x4xf32>
    %cst_19 = arith.constant dense<0.000000e+00> : vector<8x4xf32>
    %118 = tpu.matmul %116, %117, %cst_19 {dimension_numbers = #tpu.dot_dimension_numbers<[1], [0], [0], [1], [0, 0, 1, 1], [], []>} : vector<8x256xf32>, vector<256x4xf32>, vector<8x4xf32> -> vector<8x4xf32>
    %c0_20 = arith.constant 0 : index
    %c0_21 = arith.constant 0 : index
    %119 = vector.load %arg2[%c0_20, %c0_21] : memref<8x4xf32, #tpu.memory_space<vmem>>, vector<8x4xf32>
    tpu.vector_store %arg2[%c0_20, %c0_21], %118 {strides = array<i32>} : memref<8x4xf32, #tpu.memory_space<vmem>>, vector<8x4xf32>,
    return
  }
}

</mosaic_0001>

<bundles_post_ra>
// kernel: tpu_custom_call.1
= control target key start
LH: loop header
LB: loop body
LE: loop exit
PB: predicated region body
PF: predicated region fallthrough
CT: control target
= control target key end

     0   :  { %v540_v0 = vmov 1   ;;  %v541_v1 = vmov 0   ;;  %v542_v27 = vmov 683565275   ;;  %v543_v29 = vmov 2475754826   ;;  %s717_s0 = inlined_call_operand.vmem [shape: f32[8,4], index: 0, kind: input, shape index: {}]   ;;  %s718_s1 = inlined_call_operand.vmem [shape: f32[256,4], index: 1, kind: input, shape index: {}]   ;;  %s719_s2 = inlined_call_operand.vmem [shape: f32[8,4], index: 2, kind: output, shape index: {}]  }
   0x1   :  { %531 = vset.pattern.permute.xlu1 %v540_v0  ;;  %530 = vset.pattern.permute.xlu0 %v541_v1  ;;  %v11_v2 = vld [vmem:[%s717_s0] sm:$0xff]  ;;  %v350_v5 = vld [vmem:[%s718_s1 + $0x88] sm:$0xff]  ;;  %v351_v9 = vld [vmem:[%s718_s1 + $0x90] sm:$0xff]  ;;  %v544_v31 = vmov 2131351028  }
   0x2   :  { %v568_v3 = vmul.f32 0.5, %v11_v2  ;;  %v349_v4 = vld [vmem:[%s718_s1 + $0x80] sm:$0xff]  ;;  %v334_v8 = vld [vmem:[%s718_s1 + $0x8] sm:$0xff]  ;;  %v352_v12 = vld [vmem:[%s718_s1 + $0x98] sm:$0xff]  ;;  %v545_v33 = vmov 2102212464  }
   0x3   :  { %v333_v6 = vld [vmem:[%s718_s1] sm:$0xff]  ;;  %v484_v10 = vpack.c.bf16 %v350_v5, %v349_v4  ;;  %v335_v13 = vld [vmem:[%s718_s1 + $0x10] sm:$0xff]  ;;  %v336_v14 = vld [vmem:[%s718_s1 + $0x18] sm:$0xff]  ;;  %v488_v16 = vpack.c.bf16 %v352_v12, %v351_v9  ;;  %v546_v35 = vmov 920167782  }
   0x4   :  { %v16_v7 = vand.u32 2139095040, %v568_v3  ;;  %v486_v11 = vpack.c.bf16 %v334_v8, %v333_v6  ;;  %v13_v17 = vand.u32 2147483647, %v568_v3  ;;  %v490_v19 = vpack.c.bf16 %v336_v14, %v335_v13 }
   0x5   :  { %485 = vmatprep.subr.bf16.mxu0 %v484_v10  ;;  %v547_v42 = vmov 1326507024   ;;  %vm15_vm7 = vcmp.lt.s32.totalorder %v568_v3, 0  ;;  %vm105_vm15 = vweird.f32 %v568_v3 }
   0x6   :  { %v17_v15 = vshrl.u32 %v16_v7, 23  ;;  %487 = vmatpush3.bf16.msra.mxu0 %v486_v11  ;;  %v20_v21 = vand.u32 8388607, %v13_v17  ;;  %vm14_vm8 = vcmp.le.f32.partialorder %v13_v17, 0.7853982 }
   0x7   :  { %489 = vmatprep.subr.bf16.mxu0 %v488_v16 }
   0x8   :  { %v441_v18 = vadd.s32 4294967169, %v17_v15  ;;  %v21_v24 = vor.u32 8388608, %v20_v21 }
   0xa   :  { %v23_v20 = vadd.s32 1, %v441_v18  ;;  %491 = vmatpush3.bf16.msra.mxu0 %v490_v19  ;;  %v61_v44 = vshll.u32 %v21_v24, 8 }
   0xc   :  { %vm24_vm0 = vcmp.gt.s32.totalorder %v23_v20, 0 }
   0xd   :  { %v25_v22 = vsel %vm24_vm0, %v23_v20, 0 }
   0xe   :  { %v27_v23 = vand.u32 31, %v25_v22  ;;  %v26_v25 = vshrl.u32 %v25_v22, 5 }
  0x10   :  { %v28_v26 = vsub.s32 32, %v27_v23  ;;  %v30_v28 = vshll.u32 %v542_v27, %v27_v23  ;;  %v33_v30 = vshll.u32 %v543_v29, %v27_v23  ;;  %v36_v32 = vshll.u32 %v544_v31, %v27_v23 }
  0x11   :  { %v39_v34 = vshll.u32 %v545_v33, %v27_v23  ;;  %v42_v36 = vshll.u32 %v546_v35, %v27_v23  ;;  %vm45_vm1 = vcmp.lt.s32.totalorder %v26_v25, 1  ;;  %vm48_vm2 = vcmp.lt.s32.totalorder %v26_v25, 4 }
  0x12   :  { %v29_v37 = vshrl.u32 %v542_v27, %v28_v26  ;;  %v31_v38 = vshrl.u32 %v543_v29, %v28_v26  ;;  %v34_v39 = vshrl.u32 %v544_v31, %v28_v26  ;;  %v37_v40 = vshrl.u32 %v545_v33, %v28_v26 }
  0x13   :  { %v40_v41 = vshrl.u32 %v546_v35, %v28_v26  ;;  %v43_v43 = vshrl.u32 %v547_v42, %v28_v26  ;;  %vm46_vm3 = vcmp.lt.s32.totalorder %v26_v25, 2  ;;  %vm47_vm4 = vcmp.lt.s32.totalorder %v26_v25, 3 }
  0x14   :  { %v32_v45 = vor.u32 %v31_v38, %v30_v28  ;;  %v35_v46 = vor.u32 %v34_v39, %v33_v30  ;;  %v38_v47 = vor.u32 %v37_v40, %v36_v32 }
  0x15   :  { %v41_v48 = vor.u32 %v40_v41, %v39_v34  ;;  %v44_v49 = vor.u32 %v43_v43, %v42_v36 }
  0x16   :  { %v49_v50 = vsel %vm45_vm1, %v29_v37, %v32_v45  ;;  %v50_v51 = vsel %vm48_vm2, %v38_v47, 2102212464  ;;  %v53_v52 = vsel %vm45_vm1, %v32_v45, %v35_v46  ;;  %v57_v53 = vsel %vm45_vm1, %v35_v46, %v38_v47 }
  0x17   :  { %v51_v54 = vsel %vm47_vm4, %v35_v46, %v50_v51  ;;  %v54_v55 = vsel %vm48_vm2, %v41_v48, 920167782  ;;  %v58_v56 = vsel %vm48_vm2, %v44_v49, 1326507024  ;;  %v354_v49 = vld [vmem:[%s718_s1 + $0xa8] sm:$0xff] }
  0x18   :  { %v55_v57 = vsel %vm47_vm4, %v38_v47, %v54_v55  ;;  %v59_v58 = vsel %vm47_vm4, %v41_v48, %v58_v56  ;;  %v52_v59 = vsel %vm46_vm3, %v49_v50, %v51_v54  ;;  %v353_v48 = vld [vmem:[%s718_s1 + $0xa0] sm:$0xff]  ;;  %v338_v51 = vld [vmem:[%s718_s1 + $0x28] sm:$0xff]  ;;  %v355_v54 = vld [vmem:[%s718_s1 + $0xb0] sm:$0xff] }
  0x19   :  { %v56_v60 = vsel %vm46_vm3, %v53_v52, %v55_v57  ;;  %v60_v61 = vsel %vm46_vm3, %v57_v53, %v59_v58  ;;  %v68_v2 = vmul.u32 %v61_v44, %v52_v59  ;;  %v337_v50 = vld [vmem:[%s718_s1 + $0x20] sm:$0xff]  ;;  %v356_v55 = vld [vmem:[%s718_s1 + $0xb8] sm:$0xff]  ;;  %v339_v57 = vld [vmem:[%s718_s1 + $0x30] sm:$0xff] }
  0x1a   :  { %v598_v62 = vmul.u32.u64.low %v61_v44, %v60_v61  ;;  %v599_v63 = vmul.u32.u64.high %v61_v44, %v60_v61, %v598_v62  ;;  %v601_v0 = vmul.u32.u64.low %v61_v44, %v56_v60  ;;  %v602_v1 = vmul.u32.u64.high %v61_v44, %v56_v60, %v601_v0  ;;  %v340_v58 = vld [vmem:[%s718_s1 + $0x38] sm:$0xff]  ;;  %v357_v61 = vld [vmem:[%s718_s1 + $0xc0] sm:$0xff] }
  0x1b   :  { %v494_v53 = vpack.c.bf16 %v338_v51, %v337_v50  ;;  %v496_v56 = vpack.c.bf16 %v356_v55, %v355_v54  ;;  %v498_v59 = vpack.c.bf16 %v340_v58, %v339_v57  ;;  %v548_v60 = vmov 2   ;;  %v358_v62 = vld [vmem:[%s718_s1 + $0xc8] sm:$0xff] }
  0x1c   :  { %vm70_vm5 = vc.u32 %v599_v63, %v601_v0  ;;  %v71_v4 = vadd.s32 1, %v602_v1  ;;  %v69_v15 = vadd.s32 %v601_v0, %v599_v63  ;;  %v500_v63 = vpack.c.bf16 %v358_v62, %v357_v61  ;;  %v341_v0 = vld [vmem:[%s718_s1 + $0x40] sm:$0xff] }
  0x1e   :  { %v72_v5 = vsel %vm70_vm5, %v71_v4, %v602_v1  ;;  %v342_v1 = vld [vmem:[%s718_s1 + $0x48] sm:$0xff]  ;;  %v359_v4 = vld [vmem:[%s718_s1 + $0xd0] sm:$0xff] }
  0x1f   :  { %v73_v6 = vadd.s32 %v72_v5, %v68_v2  ;;  %v502_v2 = vpack.c.bf16 %v342_v1, %v341_v0  ;;  %v360_v5 = vld [vmem:[%s718_s1 + $0xd8] sm:$0xff] }
  0x21   :  { %v74_v7 = vadd.s32 536870912, %v73_v6 }
  0x23   :  { %v75_v8 = vshrl.u32 %v74_v7, 30  ;;  %v504_v7 = vpack.c.bf16 %v360_v5, %v359_v4 }
  0x25   :  { %v76_v9 = vshll.u32 %v75_v8, 30  ;;  %v99_v28 = vsub.s32 4, %v75_v8 }
  0x27   :  { %v77_v10 = vsub.s32 %v73_v6, %v76_v9  ;;  %v100_v31 = vsel %vm15_vm7, %v99_v28, %v75_v8  ;;  %v549_v6 = vmov 3   ;;  %v343_v8 = vld [vmem:[%s718_s1 + $0x50] sm:$0xff]  ;;  %v344_v9 = vld [vmem:[%s718_s1 + $0x58] sm:$0xff] }
  0x28   :  { %v102_v34 = vsel %vm14_vm8, 0, %v100_v31 }
  0x29   :  { %v79_v11 = vsub.s32 0, %v77_v10  ;;  %v209_v35 = vadd.s32 3, %v102_v34  ;;  %v106_v37 = vand.u32 3, %v102_v34 }
  0x2b   :  { %v442_v12 = vmin.u32 %v79_v11, %v77_v10  ;;  %v210_v36 = vand.u32 3, %v209_v35  ;;  %vm111_vm10 = vcmp.eq.s32.totalorder %v106_v37, 2  ;;  %vm108_vm12 = vcmp.eq.s32.totalorder %v106_v37, 0  ;;  %v361_v11 = vld [vmem:[%s718_s1 + $0xe0] sm:$0xff] }
  0x2c   :  { %vm107_vm14 = vcmp.lt.s32.totalorder %v106_v37, 2 }
  0x2d   :  { %v81_v13 = vclz %v442_v12  ;;  %vm215_vm9 = vcmp.eq.s32.totalorder %v210_v36, 2  ;;  %vm212_vm11 = vcmp.eq.s32.totalorder %v210_v36, 0  ;;  %vm211_vm13 = vcmp.lt.s32.totalorder %v210_v36, 2  ;;  %v362_v12 = vld [vmem:[%s718_s1 + $0xe8] sm:$0xff] }
  0x2f   :  { %v443_v14 = vadd.s32 4294967294, %v81_v13  ;;  %v508_v13 = vpack.c.bf16 %v362_v12, %v361_v11 }
  0x31   :  { %vm444_vm6 = vcmp.lt.s32.totalorder %v443_v14, 0 }
  0x32   :  { %v84_v16 = vsel %vm444_vm6, 0, %v443_v14  ;;  %v345_v14 = vld [vmem:[%s718_s1 + $0x60] sm:$0xff] }
  0x33   :  { %v85_v18 = vsub.s32 32, %v84_v16  ;;  %v86_v19 = vshll.u32 %v77_v10, %v84_v16  ;;  %v89_v20 = vsub.s32 4294967266, %v84_v16  ;;  %v506_v10 = vpack.c.bf16 %v344_v9, %v343_v8  ;;  %v363_v16 = vld [vmem:[%s718_s1 + $0xf0] sm:$0xff] }
  0x35   :  { %v87_v21 = vshrl.u32 %v69_v15, %v85_v18  ;;  %v90_v22 = vadd.s32 127, %v89_v20  ;;  %v346_v15 = vld [vmem:[%s718_s1 + $0x68] sm:$0xff]  ;;  %v364_v18 = vld [vmem:[%s718_s1 + $0xf8] sm:$0xff] }
  0x36   :  { %v512_v20 = vpack.c.bf16 %v364_v18, %v363_v16 }
  0x37   :  { %v88_v23 = vor.u32 %v87_v21, %v86_v19  ;;  %v91_v24 = vshll.u32 %v90_v22, 23  ;;  %v510_v19 = vpack.c.bf16 %v346_v15, %v345_v14  ;;  %v347_v21 = vld [vmem:[%s718_s1 + $0x70] sm:$0xff]  ;;  %v348_v22 = vld [vmem:[%s718_s1 + $0x78] sm:$0xff] }
  0x39   :  { %v92_v25 = vor.u32 4788187, %v91_v24  ;;  %v95_v26 = vcvt.s32.f32 %v88_v23  ;;  %v514_v23 = vpack.c.bf16 %v348_v22, %v347_v21  ;;  %v220_v24 = vlaneseq }
  0x3b   :  { %v93_v27 = vand.u32 2147483647, %v92_v25  ;;  %v685_v25 = vand.u32 127, %v220_v24 }
  0x3d   :  { %v96_v29 = vmul.f32 %v95_v26, %v93_v27  ;;  %v688_v26 = vadd.s32 128, %v685_v25  ;;  %v241_v27 = vshra.s32 %v685_v25, 6  ;;  %v315_v57 = vshra.s32 %v685_v25, 1 }
  0x3f   :  { %v97_v30 = vxor.u32 2147483648, %v96_v29  ;;  %v242_v28 = vshra.s32 %v688_v26, 6  ;;  %v260_v34 = vshra.s32 %v688_v26, 5  ;;  %v243_v35 = vand.u32 1, %v241_v27 }
  0x40   :  { %v316_v58 = vshra.s32 %v688_v26, 1  ;;  %v317_v1 = vand.u32 1, %v315_v57 }
  0x41   :  { %v98_v32 = vsel %vm15_vm7, %v97_v30, %v96_v29  ;;  %v223_v29 = vshra.s32 %v685_v25, 7  ;;  %v224_v30 = vshra.s32 %v688_v26, 7  ;;  %v244_v36 = vand.u32 1, %v242_v28 }
  0x42   :  { %v101_v33 = vsel %vm14_vm8, %v568_v3, %v98_v32  ;;  %v492_v3 = vpack.c.bf16 %v354_v49, %v353_v48  ;;  %vm245_vm0 = vcmp.eq.s32.totalorder %v243_v35, 1  ;;  %v306_v49 = vshra.s32 %v688_v26, 2 }
  0x43   :  { %536 = vcosq.f32 %v101_v33  ;;  %v225_v37 = vand.u32 1, %v223_v29  ;;  %vm246_vm1 = vcmp.eq.s32.totalorder %v244_v36, 1 }
  0x44   :  { %538 = vsinq.f32 %v101_v33  ;;  %493 = vmatprep.subr.bf16.mxu0 %v492_v3  ;;  %v259_v33 = vshra.s32 %v685_v25, 5  ;;  %v308_v62 = vand.u32 1, %v306_v49 }
  0x45   :  { %495 = vmatpush3.bf16.msra.mxu0 %v494_v53  ;;  %vm227_vm2 = vcmp.eq.s32.totalorder %v225_v37, 1 }
  0x46   :  { %497 = vmatprep.subr.bf16.mxu0 %v496_v56 }
  0x49   :  { %499 = vmatpush3.bf16.msra.mxu0 %v498_v59 }
  0x4a   :  { %501 = vmatprep.subr.bf16.mxu0 %v500_v63 }
  0x4d   :  { %v537_v38 = vpop.eup %536  ;;  %503 = vmatpush3.bf16.msra.mxu0 %v502_v2 }
  0x4e   :  { %v539_v39 = vpop.eup %538  ;;  %v112_v40 = vxor.u32 2147483648, %v537_v38  ;;  %505 = vmatprep.subr.bf16.mxu0 %v504_v7  ;;  %v318_v7 = vand.u32 1, %v316_v58 }
  0x4f   :  { %v109_v41 = vxor.u32 2147483648, %v539_v39 }
  0x50   :  { %v217_v17 = vsel %vm215_vm9, %v112_v40, %v539_v39  ;;  %v113_v42 = vsel %vm111_vm10, %v112_v40, %v539_v39  ;;  %v295_v39 = vshra.s32 %v685_v25, 3  ;;  %v296_v40 = vshra.s32 %v688_v26, 3 }
  0x51   :  { %v214_v43 = vsel %vm212_vm11, %v537_v38, %v109_v41  ;;  %v110_v44 = vsel %vm108_vm12, %v537_v38, %v109_v41  ;;  %507 = vmatpush3.bf16.msra.mxu0 %v506_v10  ;;  %v226_v38 = vand.u32 1, %v224_v30  ;;  %vm310_vm11 = vcmp.eq.s32.totalorder %v308_v62, 1 }
  0x52   :  { %v218_v45 = vsel %vm211_vm13, %v214_v43, %v217_v17  ;;  %v114_v46 = vsel %vm107_vm14, %v110_v44, %v113_v42  ;;  %509 = vmatprep.subr.bf16.mxu0 %v508_v13  ;;  %v261_v42 = vand.u32 1, %v259_v33  ;;  %v262_v43 = vand.u32 1, %v260_v34 }
  0x53   :  { %v219_v47 = vsel %vm105_vm15, nan, %v218_v45  ;;  %v115_v52 = vsel %vm105_vm15, nan, %v114_v46  ;;  %v277_v44 = vshra.s32 %v685_v25, 4  ;;  %v278_v45 = vshra.s32 %v688_v26, 4 }
  0x54   :  { %248 = vperm.xlu1 %531, %v219_v47   ;;  %231 = vperm.xlu0 %530, %v219_v47   ;;  %vm228_vm3 = vcmp.eq.s32.totalorder %v226_v38, 1  ;;  %v305_v46 = vshra.s32 %v685_v25, 2  ;;  %v298_v48 = vand.u32 1, %v296_v40  ;;  %vm263_vm4 = vcmp.eq.s32.totalorder %v261_v42, 1 }
  0x55   :  { %511 = vmatpush3.bf16.msra.mxu0 %v510_v19  ;;  %vm264_vm5 = vcmp.eq.s32.totalorder %v262_v43, 1  ;;  %v279_v50 = vand.u32 1, %v277_v44  ;;  %v280_v3 = vand.u32 1, %v278_v45  ;;  %v325_v10 = vand.u32 1, %v685_v25 }
  0x56   :  { %513 = vmatprep.subr.bf16.mxu0 %v512_v20  ;;  %v307_v59 = vand.u32 1, %v305_v46  ;;  %vm300_vm9 = vcmp.eq.s32.totalorder %v298_v48, 1  ;;  %v326_v13 = vand.u32 1, %v688_v26  ;;  %vm319_vm12 = vcmp.eq.s32.totalorder %v317_v1, 1 }
  0x57   :  { %vm281_vm6 = vcmp.eq.s32.totalorder %v279_v50, 1  ;;  %vm282_vm7 = vcmp.eq.s32.totalorder %v280_v3, 1  ;;  %vm320_vm13 = vcmp.eq.s32.totalorder %v318_v7, 1  ;;  %vm327_vm14 = vcmp.eq.s32.totalorder %v325_v10, 1 }
  0x58   :  { %252 = vperm.xlu1 %531, %v115_v52   ;;  %236 = vperm.xlu0 %530, %v115_v52   ;;  %vm309_vm10 = vcmp.eq.s32.totalorder %v307_v59, 1  ;;  %vm328_vm15 = vcmp.eq.s32.totalorder %v326_v13, 1 }
  0x59   :  { %515 = vmatpush3.bf16.msra.mxu0 %v514_v23 }
  0x5c   :  { %533 = vset.pattern.permute.xlu1 %v548_v60  ;;  %532 = vset.pattern.permute.xlu0 %v548_v60 }
  0x5d   :  { %270 = vperm.xlu1 %533, %v115_v52   ;;  %266 = vperm.xlu0 %532, %v219_v47  }
  0x61   :  { %534 = vset.pattern.permute.xlu1 %v549_v6  ;;  %535 = vset.pattern.permute.xlu0 %v549_v6 }
  0x62   :  { %284 = vperm.xlu1 %534, %v219_v47   ;;  %288 = vperm.xlu0 %535, %v115_v52   ;;  %v297_v47 = vand.u32 1, %v295_v39 }
  0x64   :  { %vm299_vm8 = vcmp.eq.s32.totalorder %v297_v47, 1 }
  0xd3   :  { %v694_v31 = vpop.permute.xlu1 %248  ;;  %v232_v32 = vpop.permute.xlu0 %231 }
  0xd7   :  { %v253_v41 = vpop.permute.xlu1 %252  ;;  %v237_v17 = vpop.permute.xlu0 %236 }
  0xd8   :  { %v255_v51 = vsel %vm245_vm0, %v694_v31, %v253_v41  ;;  %v256_v52 = vsel %vm246_vm1, %v694_v31, %v253_v41  ;;  %v239_v53 = vsel %vm227_vm2, %v232_v32, %v237_v17  ;;  %v240_v54 = vsel %vm228_vm3, %v232_v32, %v237_v17 }
  0xd9   :  { %v257_v63 = vmul.f32 %v255_v51, %v239_v53  ;;  %v258_v0 = vmul.f32 %v256_v52, %v240_v54  ;;  %v301_v14 = vsel %vm299_vm8, %v232_v32, %v237_v17  ;;  %v302_v15 = vsel %vm300_vm9, %v232_v32, %v237_v17 }
  0xda   :  { %v311_v19 = vsel %vm309_vm10, %v694_v31, %v253_v41  ;;  %v312_v20 = vsel %vm310_vm11, %v694_v31, %v253_v41  ;;  %vm435_vm0 = vcmask 31744  }
  0xdc   :  { %v271_v55 = vpop.permute.xlu1 %270  ;;  %v267_v56 = vpop.permute.xlu0 %266 }
  0xdd   :  { %v273_v60 = vsel %vm263_vm4, %v267_v56, %v271_v55  ;;  %v274_v61 = vsel %vm264_vm5, %v267_v56, %v271_v55  ;;  %v321_v23 = vsel %vm319_vm12, %v267_v56, %v271_v55  ;;  %v322_v24 = vsel %vm320_vm13, %v267_v56, %v271_v55 }
  0xde   :  { %v275_v4 = vmul.f32 %v273_v60, %v257_v63  ;;  %v276_v5 = vmul.f32 %v274_v61, %v258_v0 }
  0xe1   :  { %v285_v2 = vpop.permute.xlu1 %284  ;;  %v289_v6 = vpop.permute.xlu0 %288 }
  0xe2   :  { %v291_v8 = vsel %vm281_vm6, %v285_v2, %v289_v6  ;;  %v292_v9 = vsel %vm282_vm7, %v285_v2, %v289_v6  ;;  %v329_v27 = vsel %vm327_vm14, %v285_v2, %v289_v6  ;;  %v330_v28 = vsel %vm328_vm15, %v285_v2, %v289_v6 }
  0xe3   :  { %v293_v11 = vmul.f32 %v291_v8, %v275_v4  ;;  %v294_v12 = vmul.f32 %v292_v9, %v276_v5 }
  0xe5   :  { %v303_v16 = vmul.f32 %v301_v14, %v293_v11  ;;  %v304_v18 = vmul.f32 %v302_v15, %v294_v12 }
  0xe7   :  { %v314_v21 = vmul.f32 %v312_v20, %v304_v18  ;;  %v313_v22 = vmul.f32 %v311_v19, %v303_v16 }
  0xe9   :  { %v324_v25 = vmul.f32 %v322_v24, %v314_v21  ;;  %v323_v26 = vmul.f32 %v321_v23, %v313_v22 }
  0xeb   :  { %v332_v29 = vmul.f32 %v330_v28, %v324_v25  ;;  %v331_v30 = vmul.f32 %v329_v27, %v323_v26 }
  0xed   :  { %429 = vmatprep.mubr.f32.mxu0 %v332_v29 }
  0xee   :  { %430 = vmatmul.mubr.f32.vlgmr.msra.gmra.mrb[0].mxu0 %v331_v30 }
 0x1c1   :  { %v481_v32 = vpop.f32.mrb[0].mxu0 }
 0x1c2   :  { %v482_v33 = vpop.f32.mrb[1].mxu0 }
 0x1c3   :  { %v483_v34 = vadd.f32 %v482_v33, %v481_v32 }
 0x1c5   :  { %436 = vst.msk [vmem:[%s719_s2] sm:$0xff] %vm435_vm0, %v483_v34 }

</bundles_post_ra>
